<compile_context>
chip_gen: v5e
topology: v5e:2x2
jax: 0.10.0
libtpu: 0.0.40
codegen_flags: <defaults>
</compile_context>

<pallas_src>
import numpy as np
import jax
import jax.numpy as jnp
from jax.experimental import pallas as pl
from jax.experimental.pallas import tpu as pltpu


_TILE_CAP = 32768        # max output-row columns per block (multiple of 128)
_SPLIT_THRESHOLD = 4096  # above this, force >= 2 (even) tiles so both v7x TCs get work


def dilate_to_one(x, init_dilation):
    """JAX equivalent of dilate(x, dilation=1, init_dilation) for (n, c, l) input.

    With target dilation 1 no zero padding is ever required (new_l == l in the torch
    code), so this is a pure permute + reshape. Used only by the reference check."""
    n, c, l = x.shape
    if init_dilation == 1:
        return x
    new_n = n // init_dilation
    new_l = l * init_dilation
    x = jnp.transpose(x, (1, 2, 0)).reshape(c, new_l, new_n)
    return jnp.transpose(x, (2, 0, 1))


def _channels_first_rows(x, init_dilation):
    """(n, c, l) -> (c, rows) whose columns are in exactly the same order as the rows of
    torch's r.transpose(1,2).contiguous().view(n*l, c) after dilation to 1 (batch-major,
    time-minor). Transpose-free when the (dilated) batch dim collapses to 1."""
    n, c, l = x.shape
    assert n % init_dilation == 0, (
        f"batch dim {n} must be divisible by init_dilation {init_dilation}")
    if init_dilation == 1:
        xT = jnp.transpose(x, (1, 0, 2)).reshape(c, n * l)
        return xT, n, l
    new_n = n // init_dilation
    new_l = l * init_dilation
    # dilate == transpose(1,2,0).reshape(c,new_l,new_n).transpose(2,0,1); fold the
    # downstream channels-first flatten into the same permutation chain.
    z = jnp.transpose(x, (1, 2, 0)).reshape(c, new_l, new_n)     # z[ch, t1, b1]
    xT = jnp.transpose(z, (0, 2, 1)).reshape(c, new_n * new_l)   # xT[ch, b1*new_l + t1]
    return xT, new_n, new_l


def _final_layer_kernel(x_ref, w_ref, b_ref, o_ref):
    # relu (VPU) -> 1x1 conv as W @ X on the MXU (f32 accumulate) -> bias add ->
    # (num_classes, tile) -> (tile, num_classes) transpose on the XLU -> contiguous store.
    r = jnp.maximum(x_ref[...], 0.0)
    acc = jnp.dot(w_ref[...], r, preferred_element_type=jnp.float32) + b_ref[...]
    o_ref[...] = jnp.transpose(acc, (1, 0)).astype(o_ref.dtype)


def _row_tiling(rows, tile_cap, split_threshold):
    """Pick (tile, grid). Single full-extent block when small; otherwise >= 2 (even)
    lane-aligned tiles (multiple of 128); the ragged last block is masked by Pallas."""
    if rows <= split_threshold:
        return rows, 1
    num_tiles = max(2, -(-rows // tile_cap))
    if num_tiles % 2:
        num_tiles += 1                       # even tile count: balanced v7x 2-TC split
    tile = -(-rows // num_tiles)
    tile = (tile + 127) // 128 * 128
    return tile, -(-rows // tile)


def wavenet_final_layer(x, weight, bias, out_length, init_dilation, *,
                        tile_cap=_TILE_CAP, split_threshold=_SPLIT_THRESHOLD):
    """x: (n, in_channels, l) f32; weight: (num_classes, in_channels); bias: (num_classes,).
    Returns (out_length * (n // init_dilation), num_classes), matching the torch forward."""
    num_classes, c_in = weight.shape
    xT, new_n, new_l = _channels_first_rows(x, init_dilation)    # (c_in, new_n*new_l)
    total = new_n * new_l
    rows = out_length * new_n
    # relu + 1x1 conv are pointwise per column, so slicing the last `rows` columns here
    # is identical to torch's r[-out_length*n:, :] applied after the flatten.
    xT = xT[:, total - rows:]

    tile, grid = _row_tiling(rows, tile_cap, split_threshold)
    b2d = bias.reshape(num_classes, 1)

    # ~24 MiB at the 32768-column cap: double-buffered (c_in,tile) in + (tile,nc) out,
    # plus relu temp and f32 accumulator.  Explicit so the larger tiles never trip the
    # per-generation scoped-VMEM defaults (16 MiB on v5e).
    vmem_limit = int(min(max(4 * tile * (3 * c_in + 4 * num_classes) + (4 << 20),
                             16 << 20), 56 << 20))

    cost = pl.CostEstimate(
        flops=2 * rows * c_in * num_classes,
        transcendentals=0,
        bytes_accessed=4 * (rows * (c_in + num_classes)
                            + num_classes * c_in + num_classes),
    )

    out = pl.pallas_call(
        _final_layer_kernel,
        out_shape=jax.ShapeDtypeStruct((rows, num_classes), x.dtype),
        grid=(grid,),
        in_specs=[
            pl.BlockSpec((c_in, tile), lambda i: (0, i)),           # activations, lane-dense
            pl.BlockSpec((num_classes, c_in), lambda i: (0, 0)),    # weight (VMEM-resident)
            pl.BlockSpec((num_classes, 1), lambda i: (0, 0)),       # bias   (VMEM-resident)
        ],
        out_specs=pl.BlockSpec((tile, num_classes), lambda i: (i, 0)),
        compiler_params=pltpu.CompilerParams(
            dimension_semantics=("parallel",),
            vmem_limit_bytes=vmem_limit),
        cost_estimate=cost,
    )(xT, weight, b2d)
    return out


if __name__ == "__main__":
    in_channels = 32
    num_classes = 16
    out_length = 96
    init_dilation = 2
    n, l = init_dilation, 128          # input (n, in_channels, l); dilates to (1, 32, 256)

    key = jax.random.PRNGKey(0)
    kx, kw, kb, kx2 = jax.random.split(key, 4)
    x = jax.random.normal(kx, (n, in_channels, l), dtype=jnp.float32)
    # Conv1d(kernel_size=1) parameters (shapes from nn.Conv1d, squeezed kernel dim).
    weight = jax.random.normal(kw, (num_classes, in_channels), dtype=jnp.float32) * 0.1
    bias = jax.random.normal(kb, (num_classes,), dtype=jnp.float32) * 0.1

    def reference(xin, out_len, init_dil):
        xd = dilate_to_one(xin, init_dil)
        r = jnp.maximum(xd, 0.0)
        r = jnp.einsum("ncl,oc->nol", r, weight) + bias[None, :, None]
        nn_, cc_, ll_ = r.shape
        return jnp.transpose(r, (0, 2, 1)).reshape(nn_ * ll_, cc_)[-out_len * nn_:, :]

    # Test 1: dilated input, single full-extent block path.
    out = wavenet_final_layer(x, weight, bias, out_length, init_dilation)
    out = jax.block_until_ready(out)
    ref = reference(x, out_length, init_dilation)
    np.testing.assert_allclose(np.asarray(out), np.asarray(ref), rtol=1e-5, atol=1e-5)
    assert out.shape == (out_length * (n // init_dilation), num_classes)

    # Test 2: exercise the multi-tile grid + ragged (masked) last block, no padding.
    x2 = jax.random.normal(kx2, (1, in_channels, 300), dtype=jnp.float32)
    out2 = wavenet_final_layer(x2, weight, bias, 200, 1,
                               tile_cap=128, split_threshold=128)
    out2 = jax.block_until_ready(out2)
    ref2 = reference(x2, 200, 1)
    np.testing.assert_allclose(np.asarray(out2), np.asarray(ref2), rtol=1e-5, atol=1e-5)
    assert out2.shape == (200, num_classes)

    print("KERNEL_OK")
</pallas_src>

<mosaic_0001>
module attributes {stable_mosaic.version = 11 : i64} {
  func.func @_final_layer_kernel(%arg0: i32, %arg1: memref<32x96xf32, #tpu.memory_space<vmem>>, %arg2: memref<16x32xf32, #tpu.memory_space<vmem>>, %arg3: memref<16x1xf32, #tpu.memory_space<vmem>>, %arg4: memref<96x16xf32, #tpu.memory_space<vmem>>) attributes {dimension_semantics = [#tpu.dimension_semantics<parallel>], iteration_bounds = array<i64: 1>, scalar_prefetch = 0 : i64, scratch_operands = 0 : i64, tpu.core_type = #tpu.core_type<tc>, window_params = [{transform_indices = @transform_0, window_bounds = array<i64: 32, 96>}, {pipeline_mode = #tpu.pipeline_mode<synchronous>, transform_indices = @transform_1, window_bounds = array<i64: 16, 32>}, {pipeline_mode = #tpu.pipeline_mode<synchronous>, transform_indices = @transform_2, window_bounds = array<i64: 16, 1>}, {transform_indices = @transform_3, window_bounds = array<i64: 96, 16>}]} {
    %c0 = arith.constant 0 : index
    %c0_0 = arith.constant 0 : index
    %0 = vector.load %arg1[%c0, %c0_0] : memref<32x96xf32, #tpu.memory_space<vmem>>, vector<32x96xf32>
    %cst = arith.constant 0.000000e+00 : f32
    %1 = vector.broadcast %cst : f32 to vector<32x96xf32>
    %2 = arith.maximumf %0, %1 : vector<32x96xf32>
    %c0_1 = arith.constant 0 : index
    %c0_2 = arith.constant 0 : index
    %3 = vector.load %arg2[%c0_1, %c0_2] : memref<16x32xf32, #tpu.memory_space<vmem>>, vector<16x32xf32>
    %cst_3 = arith.constant dense<0.000000e+00> : vector<16x96xf32>
    %4 = tpu.matmul %3, %2, %cst_3 {dimension_numbers = #tpu.dot_dimension_numbers<[1], [0], [0], [1], [0, 0, 1, 1], [], []>} : vector<16x32xf32>, vector<32x96xf32>, vector<16x96xf32> -> vector<16x96xf32>
    %c0_4 = arith.constant 0 : index
    %c0_5 = arith.constant 0 : index
    %5 = vector.load %arg3[%c0_4, %c0_5] : memref<16x1xf32, #tpu.memory_space<vmem>>, vector<16x1xf32>
    %6 = vector.broadcast %5 : vector<16x1xf32> to vector<16x96xf32>
    %7 = arith.addf %4, %6 : vector<16x96xf32>
    %8 = tpu.transpose %7, [1, 0] : vector<16x96xf32> -> vector<96x16xf32>
    %c0_6 = arith.constant 0 : index
    %c0_7 = arith.constant 0 : index
    %9 = vector.load %arg4[%c0_6, %c0_7] : memref<96x16xf32, #tpu.memory_space<vmem>>, vector<96x16xf32>
    tpu.vector_store %arg4[%c0_6, %c0_7], %8 {strides = array<i32>} : memref<96x16xf32, #tpu.memory_space<vmem>>, vector<96x16xf32>,
    return
  }
  func.func @transform_0(%arg0: i32) -> (i32, i32) {
    %c0_i32 = arith.constant 0 : i32
    %c0_i32_0 = arith.constant 0 : i32
    return %c0_i32, %arg0 : i32, i32
  }
  func.func @transform_1(%arg0: i32) -> (i32, i32) {
    %c0_i32 = arith.constant 0 : i32
    %c0_i32_0 = arith.constant 0 : i32
    %c0_i32_1 = arith.constant 0 : i32
    return %c0_i32, %c0_i32_0 : i32, i32
  }
  func.func @transform_2(%arg0: i32) -> (i32, i32) {
    %c0_i32 = arith.constant 0 : i32
    %c0_i32_0 = arith.constant 0 : i32
    %c0_i32_1 = arith.constant 0 : i32
    return %c0_i32, %c0_i32_0 : i32, i32
  }
  func.func @transform_3(%arg0: i32) -> (i32, i32) {
    %c0_i32 = arith.constant 0 : i32
    %c0_i32_0 = arith.constant 0 : i32
    return %arg0, %c0_i32 : i32, i32
  }
}

</mosaic_0001>

<bundles_post_ra>
// kernel: tpu_custom_call.1
= control target key start
LH: loop header
LB: loop body
LE: loop exit
PB: predicated region body
PF: predicated region fallthrough
CT: control target
= control target key end

     0   :  { %8 = vsyncpa [#allocation3], 0  ;;  %s170_s15 = smov [#allocation2]   ;;  %s171_s17 = smov 128   ;;  %s257_s0 = inlined_call_operand.hbm [shape: f32[32,96], index: 0, kind: input, shape index: {}]   ;;  %s258_s1 = inlined_call_operand.vmem [shape: f32[16,32], index: 1, kind: input, shape index: {}]   ;;  %s259_s2 = inlined_call_operand.vmem [shape: f32[16,1], index: 2, kind: input, shape index: {}]   ;;  %s260_s3 = inlined_call_operand.vmem [shape: f32[96,16], index: 3, kind: output, shape index: {}]  }
   0x1   :  { %s13_s14 = sshll.u32 %s257_s0, 4  ;;  %s15_s16 = sshll.u32 %s170_s15, 4  ;;  %s14_s14 = int_to_ptr.hbm [resolvable:$true] %s13_s14  ;;  %s16_s16 = int_to_ptr.vmem [resolvable:$true] %s15_s16 }
   0x2   :  { %s172_s18 = smov 8  }
   0x3   :  { %21 = dma.hbm_to_vmem [thread:$0]  %s14_s14, 512, %s16_s16, [#allocation3], %s171_s17, %s171_s17, %s172_s18  }
   0x4   :  { %168 = dma.done.wait [#allocation3], 512  }
   0x5   :  { %169 = vsyncadd [#allocation3], 4294966784  ;;  %v173_v0 = vmov 0   ;;  %v33_v1 = vld [vmem:[#allocation2 + $0x18] sm:$0xff]  ;;  %v32_v2 = vld [vmem:[#allocation2 + $0x10] sm:$0xff]  ;;  %vm52_vm0 = vcmask 261120  }
   0x6   :  { %143 = vset.pattern.permute.xlu0 %v173_v0  ;;  %v31_v3 = vld [vmem:[#allocation2 + $0x8] sm:$0xff]  ;;  %v37_v4 = vmax.f32 %v33_v1, 0.0  ;;  %v36_v5 = vmax.f32 %v32_v2, 0.0  ;;  %v30_v6 = vld [vmem:[#allocation2] sm:$0xff]  ;;  %vm114_vm1 = vcmask 130048  }
   0x7   :  { %v40_v7 = vld [vmem:[%s259_s2] sm:$0xff]  ;;  %v35_v8 = vmax.f32 %v31_v3, 0.0  ;;  %v34_v9 = vmax.f32 %v30_v6, 0.0  ;;  %v39_v11 = vld [vmem:[%s258_s1 + $0x8] sm:$0xff] }
   0x8   :  { %71 = vmatpush.msra.mxu0 %v37_v4  ;;  %134 = vmatpush.msra.mxu1 %v37_v4  ;;  %v38_v10 = vld [vmem:[%s258_s1] sm:$0xff]  ;;  %v41_v12 = vld [vmem:[%s259_s2 + $0x8] sm:$0xff] }
   0x9   :  { %44 = vperm.xlu0 %143, %v40_v7  }
   0xa   :  { %72 = vmatpush.msra.mxu0 %v36_v5  ;;  %135 = vmatpush.msra.mxu1 %v36_v5 }
   0xc   :  { %73 = vmatpush.msra.mxu0 %v35_v8  ;;  %136 = vmatpush.msra.mxu1 %v35_v8 }
   0xe   :  { %74 = vmatpush.msra.mxu0 %v34_v9  ;;  %137 = vmatpush.msra.mxu1 %v34_v9 }
   0xf   :  { %132 = vmatmul.msk.f32.vlgmr.msra.gmra.mxu0 %vm52_vm0, %v38_v10  ;;  %133 = vmatmul.msk.f32.vlgmr.msra.gmra.mxu1 %vm52_vm0, %v39_v11 }
  0x11   :  { %49 = vperm.xlu0 %143, %v41_v12  }
  0x7b   :  { %v45_v13 = vpop.permute.xlu0 %44 }
  0x83   :  { %v50_v16 = vpop.permute.xlu0 %49 }
  0x8c   :  { %v76_v14 = vpop.f32.mrf.mxu0  ;;  %v79_v17 = vpop.f32.mrf.mxu1 }
  0x8d   :  { %v77_v15 = vadd.f32 %v76_v14, %v45_v13  ;;  %v80_v18 = vadd.f32 %v79_v17, %v50_v16 }
  0x8f   :  { %82 = vxpose.xlu1.b32.start [1/2] (short) (narrow) %v77_v15, 96 }
  0x97   :  { %83 = vxpose.xlu1.b32.end [2/2] (short) (narrow) %v80_v18, 96 }
 0x133   :  { %v98_v19 = vpop.trf.xlu1 }
 0x134   :  { %115 = vst.msk [vmem:[%s260_s3] sm:$0xff] %vm114_vm1, %v98_v19 }
 0x13b   :  { %v99_v20 = vpop.trf.xlu1 }
 0x13c   :  { %116 = vst.msk [vmem:[%s260_s3 + $0x8] sm:$0xff] %vm114_vm1, %v99_v20 }
 0x143   :  { %v100_v21 = vpop.trf.xlu1 }
 0x144   :  { %117 = vst.msk [vmem:[%s260_s3 + $0x10] sm:$0xff] %vm114_vm1, %v100_v21 }
 0x14b   :  { %v101_v22 = vpop.trf.xlu1 }
 0x14c   :  { %118 = vst.msk [vmem:[%s260_s3 + $0x18] sm:$0xff] %vm114_vm1, %v101_v22 }
 0x153   :  { %v102_v23 = vpop.trf.xlu1 }
 0x154   :  { %119 = vst.msk [vmem:[%s260_s3 + $0x20] sm:$0xff] %vm114_vm1, %v102_v23 }
 0x15b   :  { %v103_v24 = vpop.trf.xlu1 }
 0x15c   :  { %120 = vst.msk [vmem:[%s260_s3 + $0x28] sm:$0xff] %vm114_vm1, %v103_v24 }
 0x163   :  { %v104_v25 = vpop.trf.xlu1 }
 0x164   :  { %121 = vst.msk [vmem:[%s260_s3 + $0x30] sm:$0xff] %vm114_vm1, %v104_v25 }
 0x16b   :  { %v105_v26 = vpop.trf.xlu1 }
 0x16c   :  { %122 = vst.msk [vmem:[%s260_s3 + $0x38] sm:$0xff] %vm114_vm1, %v105_v26 }
 0x173   :  { %v106_v27 = vpop.trf.xlu1 }
 0x174   :  { %123 = vst.msk [vmem:[%s260_s3 + $0x40] sm:$0xff] %vm114_vm1, %v106_v27 }
 0x17b   :  { %v107_v28 = vpop.trf.xlu1 }
 0x17c   :  { %124 = vst.msk [vmem:[%s260_s3 + $0x48] sm:$0xff] %vm114_vm1, %v107_v28 }
 0x183   :  { %v108_v29 = vpop.trf.xlu1 }
 0x184   :  { %125 = vst.msk [vmem:[%s260_s3 + $0x50] sm:$0xff] %vm114_vm1, %v108_v29 }
 0x18b   :  { %v109_v30 = vpop.trf.xlu1 }
 0x18c   :  { %126 = vst.msk [vmem:[%s260_s3 + $0x58] sm:$0xff] %vm114_vm1, %v109_v30 }
 0x18d   :  { %131 = vsyncpa [#allocation3], 1 }

</bundles_post_ra>
